<compile_context>
chip_gen: v6e
topology: v6e:2x2x1
jax: 0.10.0
libtpu: 0.0.40
codegen_flags: <defaults>
</compile_context>

<pallas_src>
import functools
import math

import jax
import jax.numpy as jnp
from jax.experimental import pallas as pl
from jax.experimental.pallas import tpu as pltpu

_LANES = 128
_MAX_TILE_ROWS = 8192            # 8192 x 128 x 4B = 4 MiB per f32 input block
_CHUNK_ROWS = 512                # in-kernel compute chunk (temporaries ~256 KiB)
_VMEM_LIMIT_BYTES = 32 * 1024 * 1024


def _cdiv(a, b):
    return -(-a // b)


def _round_up(a, b):
    return _cdiv(a, b) * b


def _rmse_sumsq_kernel(yhat_ref, y_ref, o_ref, *,
                       rows_total, tile_rows, chunk_rows,
                       n_tiles, tiles_per_core):
    """Accumulates the sum of squared differences of this core's stripe into an
    (8, 128) f32 output slab (pure VPU work in steady state)."""
    c = pl.program_id(0)          # core stripe
    i = pl.program_id(1)          # tile within the stripe

    # Output block (one (8,128) partial-sum slab per core) stays resident across
    # the whole stripe (its block index only depends on c): zero it at stripe start.
    @pl.when(i == 0)
    def _():
        o_ref[...] = jnp.zeros_like(o_ref)

    # Global tile index processed at this step.  Core c's stripe starts at
    # c*(n_tiles - tiles_per_core) so the last tile is always in bounds; the
    # `owned` predicate avoids double counting the overlapped tile when n_tiles
    # is not a multiple of the core count.
    g = c * (n_tiles - tiles_per_core) + i
    owned = g >= c * tiles_per_core
    # Number of rows of this block that hold real data (0 if the tile is not
    # owned; < tile_rows for the partial final tile).
    rows_valid = jnp.where(owned, rows_total - g * tile_rows, 0)

    row_iota = jax.lax.broadcasted_iota(jnp.int32, (chunk_rows, _LANES), 0)

    # Statically unrolled chunk loop: large DMA block, small VPU temporaries.
    for r0 in range(0, tile_rows, chunk_rows):
        yv = yhat_ref[r0:r0 + chunk_rows, :].astype(jnp.float32)
        yt = y_ref[r0:r0 + chunk_rows, :].astype(jnp.float32)
        mask = row_iota < (rows_valid - r0)
        # Mask BEFORE squaring so garbage in out-of-bounds rows never propagates.
        d = jnp.where(mask, yv - yt, 0.0)
        o_ref[...] += jnp.sum((d * d).reshape(chunk_rows // 8, 8, _LANES), axis=0)


def rmse_loss(yhat, y, *, max_tile_rows=_MAX_TILE_ROWS, chunk_rows=_CHUNK_ROWS):
    assert yhat.shape == y.shape, "yhat and y must have the same shape"

    total = math.prod(yhat.shape) if yhat.shape else 1
    yhat_f = yhat.reshape(-1)
    y_f = y.reshape(-1)

    # Pad only the sub-128-element flat remainder with zeros (diff of zeros is 0,
    # and the mean divides by the TRUE element count).  When numel is already a
    # multiple of 128 (the common case) this is a free reshape — no HBM copy.
    pad = (-total) % _LANES
    if pad:
        yhat_f = jnp.pad(yhat_f, (0, pad))
        y_f = jnp.pad(y_f, (0, pad))
    rows = (total + pad) // _LANES
    yhat2 = yhat_f.reshape(rows, _LANES)
    y2 = y_f.reshape(rows, _LANES)

    # Tile selection: a single block for small inputs, max-size streaming blocks
    # otherwise.  tile_rows is always a multiple of chunk_rows (and of 8).
    if rows <= max_tile_rows:
        tile_rows = max(8, _round_up(rows, 8))
        c_rows = min(chunk_rows, tile_rows)
        tile_rows = _round_up(tile_rows, c_rows)
        n_tiles = 1
    else:
        tile_rows = max_tile_rows
        c_rows = chunk_rows
        n_tiles = _cdiv(rows, tile_rows)

    # Core-parallel stripes (uses both TensorCores on v7x / megacore parts); a
    # near-free pair of sequential stripes on single-core chips.
    num_cores = 2 if n_tiles >= 2 else 1
    tiles_per_core = _cdiv(n_tiles, num_cores)
    stripe_offset = n_tiles - tiles_per_core   # start tile of core 1 (in bounds)

    def in_index_map(c, i):
        return (c * stripe_offset + i, 0)

    kernel = functools.partial(
        _rmse_sumsq_kernel,
        rows_total=rows,
        tile_rows=tile_rows,
        chunk_rows=c_rows,
        n_tiles=n_tiles,
        tiles_per_core=tiles_per_core,
    )

    itemsize = jnp.dtype(yhat.dtype).itemsize
    streamed = rows * _LANES * itemsize
    cost = pl.CostEstimate(
        flops=3 * rows * _LANES,                     # sub, mul, add per element
        transcendentals=0,                           # sqrt lives in the wrapper
        bytes_accessed=2 * streamed + num_cores * 8 * _LANES * 4,
    )

    partials = pl.pallas_call(
        kernel,
        out_shape=jax.ShapeDtypeStruct((num_cores * 8, _LANES), jnp.float32),
        grid_spec=pltpu.PrefetchScalarGridSpec(
            num_scalar_prefetch=0,
            grid=(num_cores, tiles_per_core),
            in_specs=[
                pl.BlockSpec((tile_rows, _LANES), in_index_map),
                pl.BlockSpec((tile_rows, _LANES), in_index_map),
            ],
            out_specs=pl.BlockSpec((8, _LANES), lambda c, i: (c, 0)),
        ),
        compiler_params=pltpu.CompilerParams(
            dimension_semantics=("parallel", "arbitrary"),
            vmem_limit_bytes=_VMEM_LIMIT_BYTES,
        ),
        cost_estimate=cost,
    )(yhat2, y2)

    # Combine per-core partial sums of squares, then mean + sqrt (scalar XLA ops).
    mse = jnp.sum(partials) / jnp.float32(total)
    return jnp.sqrt(mse).astype(yhat.dtype)


if __name__ == "__main__":
    key = jax.random.PRNGKey(0)
    k1, k2, k3, k4, k5, k6 = jax.random.split(key, 6)

    # Regression-head-like shapes: (batch=2, ch=4, 16, 16).
    yhat = jax.random.normal(k1, (2, 4, 16, 16), dtype=jnp.float32)
    y = jax.random.normal(k2, (2, 4, 16, 16), dtype=jnp.float32)
    loss = jax.block_until_ready(rmse_loss(yhat, y))
    ref = jnp.sqrt(jnp.mean((yhat - y) ** 2))
    assert jnp.allclose(loss, ref, rtol=1e-5, atol=1e-6), (loss, ref)

    # Odd, non-divisible shape exercising the <128-element zero-pad path.
    yhat2 = jax.random.normal(k3, (2, 3, 15, 9), dtype=jnp.float32)
    y2 = jax.random.normal(k4, (2, 3, 15, 9), dtype=jnp.float32)
    loss2 = jax.block_until_ready(rmse_loss(yhat2, y2))
    ref2 = jnp.sqrt(jnp.mean((yhat2 - y2) ** 2))
    assert jnp.allclose(loss2, ref2, rtol=1e-5, atol=1e-6), (loss2, ref2)

    # Larger input exercising the streaming path: multiple 8192-row tiles, a
    # partial row-masked final tile, and the dual-core stripe split (n_tiles=3).
    yhat3 = jax.random.normal(k5, (48, 48, 1000), dtype=jnp.float32)
    y3 = jax.random.normal(k6, (48, 48, 1000), dtype=jnp.float32)
    loss3 = jax.block_until_ready(rmse_loss(yhat3, y3))
    ref3 = jnp.sqrt(jnp.mean((yhat3 - y3) ** 2))
    assert jnp.allclose(loss3, ref3, rtol=1e-4, atol=1e-6), (loss3, ref3)

    print("KERNEL_OK")
</pallas_src>

<mosaic_0001>
module attributes {stable_mosaic.version = 11 : i64} {
  func.func @_rmse_sumsq_kernel(%arg0: i32, %arg1: i32, %arg2: memref<16x128xf32, #tpu.memory_space<vmem>>, %arg3: memref<16x128xf32, #tpu.memory_space<vmem>>, %arg4: memref<8x128xf32, #tpu.memory_space<vmem>>) attributes {dimension_semantics = [#tpu.dimension_semantics<parallel>, #tpu.dimension_semantics<arbitrary>], iteration_bounds = array<i64: 1, 1>, scalar_prefetch = 0 : i64, scratch_operands = 0 : i64, tpu.core_type = #tpu.core_type<tc>, window_params = [{transform_indices = @transform_0, window_bounds = array<i64: 16, 128>}, {transform_indices = @transform_1, window_bounds = array<i64: 16, 128>}, {transform_indices = @transform_2, window_bounds = array<i64: 8, 128>}]} {
    %c0_i32 = arith.constant 0 : i32
    %0 = arith.cmpi eq, %arg1, %c0_i32 : i32
    %1 = arith.extui %0 : i1 to i32
    %c0_i32_0 = arith.constant 0 : i32
    %2 = arith.cmpi ne, %1, %c0_i32_0 : i32
    scf.if %2 {
      %cst_13 = arith.constant 0.000000e+00 : f32
      %25 = vector.broadcast %cst_13 : f32 to vector<8x128xf32>
      %c0_14 = arith.constant 0 : index
      %c0_15 = arith.constant 0 : index
      %26 = vector.load %arg4[%c0_14, %c0_15] : memref<8x128xf32, #tpu.memory_space<vmem>>, vector<8x128xf32>
      tpu.vector_store %arg4[%c0_14, %c0_15], %25 {strides = array<i32>} : memref<8x128xf32, #tpu.memory_space<vmem>>, vector<8x128xf32>,
    } else {
    }
    %c0_i32_1 = arith.constant 0 : i32
    %3 = arith.muli %arg0, %c0_i32_1 : i32
    %4 = arith.addi %3, %arg1 : i32
    %c1_i32 = arith.constant 1 : i32
    %5 = arith.muli %arg0, %c1_i32 : i32
    %6 = arith.cmpi sge, %4, %5 : i32
    %c16_i32 = arith.constant 16 : i32
    %7 = arith.muli %4, %c16_i32 : i32
    %c16_i32_2 = arith.constant 16 : i32
    %8 = arith.subi %c16_i32_2, %7 : i32
    %c0_i32_3 = arith.constant 0 : i32
    %9 = arith.select %6, %8, %c0_i32_3 : i32
    %10 = tpu.iota {dimensions = array<i32: 0>} : vector<16x128xi32>
    %c0 = arith.constant 0 : index
    %c0_4 = arith.constant 0 : index
    %11 = vector.load %arg2[%c0, %c0_4] : memref<16x128xf32, #tpu.memory_space<vmem>>, vector<16x128xf32>
    %c0_5 = arith.constant 0 : index
    %c0_6 = arith.constant 0 : index
    %12 = vector.load %arg3[%c0_5, %c0_6] : memref<16x128xf32, #tpu.memory_space<vmem>>, vector<16x128xf32>
    %c0_i32_7 = arith.constant 0 : i32
    %13 = arith.subi %9, %c0_i32_7 : i32
    %14 = vector.broadcast %13 : i32 to vector<16x128xi32>
    %15 = arith.cmpi slt, %10, %14 : vector<16x128xi32>
    %16 = arith.subf %11, %12 : vector<16x128xf32>
    %cst = arith.constant 0.000000e+00 : f32
    %17 = vector.broadcast %cst : f32 to vector<16x128xf32>
    %18 = arith.select %15, %16, %17 : vector<16x128xi1>, vector<16x128xf32>
    %c0_8 = arith.constant 0 : index
    %c0_9 = arith.constant 0 : index
    %19 = vector.load %arg4[%c0_8, %c0_9] : memref<8x128xf32, #tpu.memory_space<vmem>>, vector<8x128xf32>
    %20 = arith.mulf %18, %18 : vector<16x128xf32>
    %21 = vector.shape_cast %20 : vector<16x128xf32> to vector<2x8x128xf32>
    %cst_10 = arith.constant dense<0.000000e+00> : vector<8x128xf32>
    %22 = vector.multi_reduction <add>, %21, %cst_10 [0] : vector<2x8x128xf32> to vector<8x128xf32>
    %23 = arith.addf %19, %22 : vector<8x128xf32>
    %c0_11 = arith.constant 0 : index
    %c0_12 = arith.constant 0 : index
    %24 = vector.load %arg4[%c0_11, %c0_12] : memref<8x128xf32, #tpu.memory_space<vmem>>, vector<8x128xf32>
    tpu.vector_store %arg4[%c0_11, %c0_12], %23 {strides = array<i32>} : memref<8x128xf32, #tpu.memory_space<vmem>>, vector<8x128xf32>,
    return
  }
  func.func @transform_0(%arg0: i32, %arg1: i32) -> (i32, i32) {
    %c0_i32 = arith.constant 0 : i32
    %0 = arith.muli %arg0, %c0_i32 : i32
    %1 = arith.addi %0, %arg1 : i32
    %c0_i32_0 = arith.constant 0 : i32
    %c0_i32_1 = arith.constant 0 : i32
    return %1, %c0_i32_0 : i32, i32
  }
  func.func @transform_1(%arg0: i32, %arg1: i32) -> (i32, i32) {
    %c0_i32 = arith.constant 0 : i32
    %0 = arith.muli %arg0, %c0_i32 : i32
    %1 = arith.addi %0, %arg1 : i32
    %c0_i32_0 = arith.constant 0 : i32
    %c0_i32_1 = arith.constant 0 : i32
    return %1, %c0_i32_0 : i32, i32
  }
  func.func @transform_2(%arg0: i32, %arg1: i32) -> (i32, i32) {
    %c0_i32 = arith.constant 0 : i32
    %c0_i32_0 = arith.constant 0 : i32
    return %arg0, %c0_i32 : i32, i32
  }
}

</mosaic_0001>

<bundles_post_ra>
// kernel: tpu_custom_call.1
= control target key start
LH: loop header
LB: loop body
LE: loop exit
PB: predicated region body
PF: predicated region fallthrough
CT: control target
= control target key end

     0   :  { %7 = vsyncpa [#allocation3], 0  ;;  %s186_s0 = inlined_call_operand.hbm [shape: f32[16,128], index: 0, kind: input, shape index: {}]   ;;  %s187_s1 = inlined_call_operand.hbm [shape: f32[16,128], index: 1, kind: input, shape index: {}]   ;;  %s188_s2 = inlined_call_operand.hbm [shape: f32[8,128], index: 2, kind: output, shape index: {}]  }
   0x1   :  { %8 = vsyncpa [#allocation6], 0 }
   0x2   :  { %9 = vsyncpa [#allocation4], 0  ;;  %s157_s9 = smov [#allocation2]  }
   0x3   :  { %s15_s10 = sshll.u32 %s157_s9, 4  ;;  %s16_s10 = int_to_ptr.vmem [resolvable:$true] %s15_s10 }
   0x4   :  { %s99_s11 = scalar_lea.vmem %s16_s10, 256  ;;  %p104_p1 = scmp.lt.s32.totalorder %s16_s10, %s16_s10 }
   0x5   :  { %p100_p0 = scmp.ne.s32.totalorder %s16_s10, %s99_s11  ;;  %p105_p2 = scmp.lt.s32.totalorder %s99_s11, %s99_s11 }
   0x7   :  { %p106_p3 = por %p105_p2, %p104_p1 }
   0x9   :  { %p107_p4 = pnand %p106_p3, %p100_p0 }
   0xb   :  { %110 = shalt.err (!%p107_p4)
}
   0xc   :  { %s158_s12 = smov 128   ;;  %s159_s13 = smov 8  }
   0xd   :  { %21 = dma.hbm_to_vmem [thread:$0]  %s186_s0, 256, %s16_s10, [#allocation3], %s158_s12, %s158_s12, %s159_s13  }
   0xe   :  { %s160_s16 = smov [#allocation5]  }
   0xf   :  { %s27_s17 = sshll.u32 %s160_s16, 4  ;;  %s28_s17 = int_to_ptr.vmem [resolvable:$true] %s27_s17 }
  0x10   :  { %s119_s18 = scalar_lea.vmem %s28_s17, 256  ;;  %p124_p6 = scmp.lt.s32.totalorder %s28_s17, %s28_s17 }
  0x11   :  { %p120_p5 = scmp.ne.s32.totalorder %s28_s17, %s119_s18  ;;  %p125_p7 = scmp.lt.s32.totalorder %s119_s18, %s119_s18 }
  0x13   :  { %p126_p8 = por %p125_p7, %p124_p6 }
  0x15   :  { %p127_p9 = pnand %p126_p8, %p120_p5 }
  0x17   :  { %130 = shalt.err (!%p127_p9)
}
  0x18   :  { %33 = dma.hbm_to_vmem [thread:$0]  %s187_s1, 256, %s28_s17, [#allocation6], %s158_s12, %s158_s12, %s159_s13  }
  0x19   :  { %151 = dma.done.wait [#allocation3], 256  }
  0x1a   :  { %152 = vsyncadd [#allocation3], 4294967040 }
  0x1b   :  { %153 = dma.done.wait [#allocation6], 256  }
  0x1c   :  { %154 = vsyncadd [#allocation6], 4294967040  ;;  %v52_v0 = vld [vmem:[#allocation2] sm:$0xff]  ;;  %v53_v1 = vld [vmem:[#allocation2 + $0x8] sm:$0xff]  ;;  %s161_s0 = smov [#allocation7]  }
  0x1d   :  { %v54_v2 = vld [vmem:[#allocation5] sm:$0xff]  ;;  %v55_v3 = vld [vmem:[#allocation5 + $0x8] sm:$0xff]  ;;  %s75_s21 = sshll.u32 %s161_s0, 4  ;;  %s76_s21 = int_to_ptr.vmem [resolvable:$true] %s75_s21 }
  0x1e   :  { %v59_v4 = vsub.f32 %v52_v0, %v54_v2  ;;  %v60_v5 = vsub.f32 %v53_v1, %v55_v3  ;;  %s131_s22 = scalar_lea.vmem %s76_s21, 128  ;;  %p136_p11 = scmp.lt.s32.totalorder %s76_s21, %s76_s21 }
  0x1f   :  { %p132_p10 = scmp.ne.s32.totalorder %s76_s21, %s131_s22  ;;  %p137_p12 = scmp.lt.s32.totalorder %s131_s22, %s131_s22 }
  0x20   :  { %v64_v6 = vmul.f32 %v59_v4, %v59_v4  ;;  %v65_v7 = vmul.f32 %v60_v5, %v60_v5 }
  0x21   :  { %p138_p13 = por %p137_p12, %p136_p11 }
  0x22   :  { %v66_v8 = vadd.f32 %v65_v7, %v64_v6 }
  0x23   :  { %p139_p0 = pnand %p138_p13, %p132_p10 }
  0x24   :  { %68 = vst [vmem:[#allocation7] sm:$0xff] %v66_v8 }
  0x25   :  { %142 = shalt.err (!%p139_p0)
}
  0x26   :  { %78 = dma.vmem_to_hbm [thread:$0]  %s76_s21, 128, %s188_s2, [#allocation4]  }
  0x27   :  { %155 = dma.done.wait [#allocation4], 128  }
  0x28   :  { %156 = vsyncadd [#allocation4], 4294967168 }
  0x29   :  { %82 = vsyncpa [#allocation3], 1 }
  0x2a   :  { %83 = vsyncpa [#allocation6], 1 }
  0x2b   :  { %84 = vsyncpa [#allocation4], 1 }

</bundles_post_ra>
